<compile_context>
chip_gen: v6e
topology: v6e:2x2x1
jax: 0.10.0
libtpu: 0.0.40
codegen_flags: <defaults>
</compile_context>

<pallas_src>
import functools

import jax
import jax.numpy as jnp
from jax.experimental import pallas as pl
from jax.experimental.pallas import tpu as pltpu

BN_EPS = 1e-5
MXU_DTYPE = jnp.bfloat16      # matmul-input dtype (f32 accumulation on the MXU)


# ----------------------------- Pallas kernel ------------------------------- #
def shared_bottom_kernel(n_layers, x_ref, *refs):
    """refs = [(W, b) * n_layers,   # bottom + fused tower layers (BN folded) + ReLU
               W_head, b_head,      # fused block-diagonal per-task output heads
               out_ref]
    Layer 0's weight already merges the categorical-embedding columns with the
    pre-folded numerical Linear, so the whole network is one matmul chain.
    """
    it = iter(refs)
    h = x_ref[...]                                              # (tb, in_dim) bf16
    for _ in range(n_layers):
        W = next(it)[...]
        b = next(it)[...]
        h = jnp.maximum(
            jnp.dot(h, W, preferred_element_type=jnp.float32) + b, 0.0
        ).astype(MXU_DTYPE)
        # TODO(synk): Dropout is identity here (eval-mode semantics).
    W_head = next(it)[...]
    b_head = next(it)[...]
    logits = jnp.dot(h, W_head, preferred_element_type=jnp.float32) + b_head
    out_ref = next(it)
    out_ref[...] = jax.nn.sigmoid(logits)                       # (tb, task_num) f32


# ----------------------------- parameter init ------------------------------ #
def _linear_init(key, in_dim, out_dim):
    """torch.nn.Linear default init: U(-1/sqrt(in_dim), 1/sqrt(in_dim))."""
    k_w, k_b = jax.random.split(key)
    bound = 1.0 / (in_dim ** 0.5)
    W = jax.random.uniform(k_w, (in_dim, out_dim), jnp.float32, -bound, bound)
    b = jax.random.uniform(k_b, (1, out_dim), jnp.float32, -bound, bound)
    return W, b


def _bn_init(dim):
    """Eval-mode BatchNorm1d parameters/statistics (fresh init values)."""
    return {"gamma": jnp.ones((1, dim), jnp.float32),
            "beta": jnp.zeros((1, dim), jnp.float32),
            "mean": jnp.zeros((1, dim), jnp.float32),
            "var": jnp.ones((1, dim), jnp.float32)}


def init_params(key, field_dims, numerical_num, embed_dim,
                bottom_mlp_dims, tower_mlp_dims, task_num):
    n_fields = len(field_dims)
    embed_output_dim = (n_fields + 1) * embed_dim
    keys = jax.random.split(key, 64)
    ki = iter(range(64))

    params = {}
    # EmbeddingLayer: single table of sum(field_dims) rows, xavier_uniform init
    total_rows = int(sum(field_dims))
    bound = (6.0 / (total_rows + embed_dim)) ** 0.5
    params["embedding"] = jax.random.uniform(
        keys[next(ki)], (total_rows, embed_dim), jnp.float32, -bound, bound)

    # numerical Linear
    params["W_num"], params["b_num"] = _linear_init(
        keys[next(ki)], numerical_num, embed_dim)

    # bottom MLP (Linear + BN + ReLU per layer, no output layer)
    bottom = []
    in_dim = embed_output_dim
    for d in bottom_mlp_dims:
        W, b = _linear_init(keys[next(ki)], in_dim, d)
        bottom.append({"W": W, "b": b, "bn": _bn_init(d)})
        in_dim = d
    params["bottom"] = bottom

    # per-task towers (Linear + BN + ReLU per layer, plus a Linear(.,1) head)
    towers = []
    for _ in range(task_num):
        hidden = []
        in_dim = bottom_mlp_dims[-1]
        for d in tower_mlp_dims:
            W, b = _linear_init(keys[next(ki)], in_dim, d)
            hidden.append({"W": W, "b": b, "bn": _bn_init(d)})
            in_dim = d
        W_out, b_out = _linear_init(keys[next(ki)], in_dim, 1)
        towers.append({"hidden": hidden, "W_out": W_out, "b_out": b_out})
    params["towers"] = towers

    return params


# ------------------------- one-time weight packing -------------------------- #
def _fold_bn(layer):
    """Fold eval-mode BN (running stats) into the preceding Linear."""
    bn = layer["bn"]
    scale = bn["gamma"] / jnp.sqrt(bn["var"] + BN_EPS)
    shift = bn["beta"] - bn["mean"] * scale
    W = layer["W"] * scale                              # column-wise
    b = layer["b"] * scale + shift
    return W, b


def pack_params(params, field_dims, embed_dim):
    """Fold BN + numerical Linear, fuse towers, cast to bf16. Done once on host."""
    n_fields = len(field_dims)
    bottom = params["bottom"]
    towers = params["towers"]
    task_num = len(towers)
    n_bottom = len(bottom)
    n_tower = len(towers[0]["hidden"])

    # --- bottom layer 0: fold BN, fold numerical Linear, merge into one matrix ---
    W0, b0 = _fold_bn(bottom[0])                        # ((F+1)*E, d0)
    split = n_fields * embed_dim
    W0_cat, W0_num = W0[:split], W0[split:]             # (F*E, d0), (E, d0)
    W_num_eff = params["W_num"] @ W0_num                 # (numerical_num, d0)
    b0_eff = b0 + params["b_num"] @ W0_num                # (1, d0)
    W0_full = jnp.concatenate([W0_cat, W_num_eff], axis=0)   # (F*E + num, d0)

    weights = [W0_full.astype(MXU_DTYPE), b0_eff.astype(jnp.float32)]

    # --- remaining bottom layers ---
    for layer in bottom[1:]:
        W, b = _fold_bn(layer)
        weights += [W.astype(MXU_DTYPE), b.astype(jnp.float32)]

    # --- towers: fuse depth-wise across tasks ---
    for d in range(n_tower):
        Ws, bs = [], []
        for tw in towers:
            W, b = _fold_bn(tw["hidden"][d])
            Ws.append(W)
            bs.append(b)
        if d == 0:
            W_fused = jnp.concatenate(Ws, axis=1)        # shared input
        else:
            W_fused = jax.scipy.linalg.block_diag(*Ws)   # per-task block-diag
        b_fused = jnp.concatenate(bs, axis=1)
        weights += [W_fused.astype(MXU_DTYPE), b_fused.astype(jnp.float32)]

    # --- fused per-task output heads (exactly task_num output columns) ---
    if n_tower > 0:
        W_head = jax.scipy.linalg.block_diag(*[tw["W_out"] for tw in towers])
    else:
        W_head = jnp.concatenate([tw["W_out"] for tw in towers], axis=1)
    b_head = jnp.concatenate([tw["b_out"] for tw in towers], axis=1)   # (1, task_num)
    weights += [W_head.astype(MXU_DTYPE), b_head.astype(jnp.float32)]

    # embedding table (bf16 halves gather bytes) + torchfm-style field offsets
    off = [0]
    for fd in field_dims[:-1]:
        off.append(off[-1] + int(fd))
    offsets = jnp.asarray(off, jnp.int32)
    emb_table = params["embedding"].astype(MXU_DTYPE)

    meta = (n_bottom + n_tower, task_num)
    return emb_table, offsets, tuple(weights), meta


# -------------------------------- forward ----------------------------------- #
def _vmem_limit_bytes(tb, in_dim, task_num, weights, single_buffer_weights):
    """Explicit VMEM budget: 2x activation tiles + weights (+ headroom), <= 48 MiB."""
    act_in = 2 * tb * in_dim * 2                 # double-buffered bf16 input tiles
    act_out = 2 * tb * task_num * 4              # double-buffered f32 output tiles
    w_bytes = sum(int(w.size) * w.dtype.itemsize for w in weights)
    if not single_buffer_weights:
        w_bytes *= 2
    need = act_in + act_out + w_bytes + (4 << 20)
    return int(min(max(need, 16 << 20), 48 << 20))


@functools.partial(
    jax.jit,
    static_argnames=("n_layers", "task_num", "tb", "single_buffer_weights"))
def _packed_forward(emb_table, offsets, weights, categorical_x, numerical_x,
                    n_layers, task_num, tb, single_buffer_weights):
    B = categorical_x.shape[0]
    n_fields = categorical_x.shape[1]
    E = emb_table.shape[1]

    # Degenerate tiny batches (< one bf16 tile): pad the *cheap raw* inputs only.
    if B < tb:
        pad = tb - B
        categorical_x = jnp.pad(categorical_x, ((0, pad), (0, 0)))
        numerical_x = jnp.pad(numerical_x, ((0, pad), (0, 0)))
    Bq = categorical_x.shape[0]

    # Embedding gather (data-dependent lookup) stays as XLA glue; fused with the
    # concat so the (Bq, F*E+num) bf16 kernel input is written to HBM exactly once.
    # TODO(synk): an in-kernel DMA-gather of table rows would remove this round trip.
    idx = categorical_x.astype(jnp.int32) + offsets[None, :]
    cat_emb = emb_table[idx].reshape(Bq, n_fields * E)           # (Bq, F*E) bf16
    x = jnp.concatenate([cat_emb, numerical_x.astype(MXU_DTYPE)], axis=1)
    in_dim = x.shape[1]

    num_blocks = pl.cdiv(Bq, tb)
    kernel = functools.partial(shared_bottom_kernel, n_layers)

    x_spec = pl.BlockSpec((tb, in_dim), lambda i: (i, 0))
    if single_buffer_weights:
        # Constant index_map => never re-fetched; single buffer halves weight VMEM.
        weight_specs = [
            pl.BlockSpec(w.shape, lambda i: (0, 0), pipeline_mode=pl.Buffered(1))
            for w in weights]
    else:
        weight_specs = [pl.BlockSpec(w.shape, lambda i: (0, 0)) for w in weights]

    out = pl.pallas_call(
        kernel,
        # Output allocation rounded up to whole tiles; ragged last-block input reads
        # are bounded by Pallas and the garbage rows are sliced off below.
        out_shape=jax.ShapeDtypeStruct((num_blocks * tb, task_num), jnp.float32),
        grid=(num_blocks,),
        in_specs=[x_spec] + weight_specs,
        out_specs=pl.BlockSpec((tb, task_num), lambda i: (i, 0)),
        compiler_params=pltpu.CompilerParams(
            dimension_semantics=("parallel",),
            vmem_limit_bytes=_vmem_limit_bytes(
                tb, in_dim, task_num, weights, single_buffer_weights)),
    )(x, *weights)

    return out[:B, :]                                            # (B, task_num) f32


def shared_bottom_forward(packed, categorical_x, numerical_x, batch_tile=512):
    """Returns a list of task_num arrays of shape (B,), matching the torch module."""
    emb_table, offsets, weights, (n_layers, task_num) = packed
    B = categorical_x.shape[0]

    # Big tiles amortize per-grid-step overhead; keep >= 2 grid steps when the batch
    # allows (v7x has 2 TensorCores) and round to a multiple of 16 (bf16 sublanes).
    def rup16(v):
        return ((v + 15) // 16) * 16

    tb = min(batch_tile, max(16, rup16(pl.cdiv(B, 2))))
    kwargs = dict(n_layers=n_layers, task_num=task_num, tb=tb)
    try:
        probs = _packed_forward(emb_table, offsets, weights,
                                categorical_x, numerical_x,
                                single_buffer_weights=True, **kwargs)
        probs = jax.block_until_ready(probs)
    except Exception:
        # Fallback for JAX versions that reject single-buffered (pl.Buffered(1)) specs.
        probs = _packed_forward(emb_table, offsets, weights,
                                categorical_x, numerical_x,
                                single_buffer_weights=False, **kwargs)
    return [probs[:, i] for i in range(task_num)]


# --------------------------------- main ------------------------------------- #
if __name__ == "__main__":
    # small config consistent with the module's __init__
    field_dims = (10, 20, 30)        # categorical_field_dims
    numerical_num = 5
    embed_dim = 16
    bottom_mlp_dims = (64, 32)
    tower_mlp_dims = (32, 16)
    task_num = 2
    batch = 8

    key = jax.random.PRNGKey(0)
    k_params, k_cat, k_num = jax.random.split(key, 3)

    params = init_params(k_params, field_dims, numerical_num, embed_dim,
                         bottom_mlp_dims, tower_mlp_dims, task_num)
    packed = pack_params(params, field_dims, embed_dim)

    categorical_x = jnp.stack(
        [jax.random.randint(jax.random.fold_in(k_cat, i), (batch,), 0, d)
         for i, d in enumerate(field_dims)], axis=1)             # (B, F) int
    numerical_x = jax.random.normal(k_num, (batch, numerical_num), jnp.float32)

    results = shared_bottom_forward(packed, categorical_x, numerical_x)
    results = jax.block_until_ready(results)

    assert len(results) == task_num
    for r in results:
        assert r.shape == (batch,)
        assert bool(jnp.all(jnp.isfinite(r)))
        assert bool(jnp.all((r >= 0.0) & (r <= 1.0)))

    print("KERNEL_OK")
</pallas_src>

<mosaic_0001>
module attributes {stable_mosaic.version = 11 : i64} {
  func.func @shared_bottom_kernel(%arg0: i32, %arg1: memref<16x53xbf16, #tpu.memory_space<vmem>>, %arg2: memref<53x64xbf16, #tpu.memory_space<vmem>>, %arg3: memref<1x64xf32, #tpu.memory_space<vmem>>, %arg4: memref<64x32xbf16, #tpu.memory_space<vmem>>, %arg5: memref<1x32xf32, #tpu.memory_space<vmem>>, %arg6: memref<32x64xbf16, #tpu.memory_space<vmem>>, %arg7: memref<1x64xf32, #tpu.memory_space<vmem>>, %arg8: memref<64x32xbf16, #tpu.memory_space<vmem>>, %arg9: memref<1x32xf32, #tpu.memory_space<vmem>>, %arg10: memref<32x2xbf16, #tpu.memory_space<vmem>>, %arg11: memref<1x2xf32, #tpu.memory_space<vmem>>, %arg12: memref<16x2xf32, #tpu.memory_space<vmem>>) attributes {dimension_semantics = [#tpu.dimension_semantics<parallel>], iteration_bounds = array<i64: 1>, scalar_prefetch = 0 : i64, scratch_operands = 0 : i64, tpu.core_type = #tpu.core_type<tc>, window_params = [{transform_indices = @transform_0, window_bounds = array<i64: 16, 53>}, {pipeline_mode = #tpu.pipeline_mode<synchronous>, transform_indices = @transform_1, window_bounds = array<i64: 53, 64>}, {pipeline_mode = #tpu.pipeline_mode<synchronous>, transform_indices = @transform_2, window_bounds = array<i64: 1, 64>}, {pipeline_mode = #tpu.pipeline_mode<synchronous>, transform_indices = @transform_3, window_bounds = array<i64: 64, 32>}, {pipeline_mode = #tpu.pipeline_mode<synchronous>, transform_indices = @transform_4, window_bounds = array<i64: 1, 32>}, {pipeline_mode = #tpu.pipeline_mode<synchronous>, transform_indices = @transform_5, window_bounds = array<i64: 32, 64>}, {pipeline_mode = #tpu.pipeline_mode<synchronous>, transform_indices = @transform_6, window_bounds = array<i64: 1, 64>}, {pipeline_mode = #tpu.pipeline_mode<synchronous>, transform_indices = @transform_7, window_bounds = array<i64: 64, 32>}, {pipeline_mode = #tpu.pipeline_mode<synchronous>, transform_indices = @transform_8, window_bounds = array<i64: 1, 32>}, {pipeline_mode = #tpu.pipeline_mode<synchronous>, transform_indices = @transform_9, window_bounds = array<i64: 32, 2>}, {pipeline_mode = #tpu.pipeline_mode<synchronous>, transform_indices = @transform_10, window_bounds = array<i64: 1, 2>}, {transform_indices = @transform_11, window_bounds = array<i64: 16, 2>}]} {
    %c0 = arith.constant 0 : index
    %c0_0 = arith.constant 0 : index
    %0 = vector.load %arg1[%c0, %c0_0] : memref<16x53xbf16, #tpu.memory_space<vmem>>, vector<16x53xbf16>
    %c0_1 = arith.constant 0 : index
    %c0_2 = arith.constant 0 : index
    %1 = vector.load %arg2[%c0_1, %c0_2] : memref<53x64xbf16, #tpu.memory_space<vmem>>, vector<53x64xbf16>
    %c0_3 = arith.constant 0 : index
    %c0_4 = arith.constant 0 : index
    %2 = vector.load %arg3[%c0_3, %c0_4] : memref<1x64xf32, #tpu.memory_space<vmem>>, vector<1x64xf32>
    %cst = arith.constant dense<0.000000e+00> : vector<16x64xf32>
    %3 = tpu.matmul %0, %1, %cst {dimension_numbers = #tpu.dot_dimension_numbers<[1], [0], [0], [1], [0, 0, 1, 1], [], []>} : vector<16x53xbf16>, vector<53x64xbf16>, vector<16x64xf32> -> vector<16x64xf32>
    %4 = vector.broadcast %2 : vector<1x64xf32> to vector<16x64xf32>
    %5 = arith.addf %3, %4 : vector<16x64xf32>
    %cst_5 = arith.constant 0.000000e+00 : f32
    %6 = vector.broadcast %cst_5 : f32 to vector<16x64xf32>
    %7 = arith.maximumf %5, %6 : vector<16x64xf32>
    %8 = arith.truncf %7 : vector<16x64xf32> to vector<16x64xbf16>
    %c0_6 = arith.constant 0 : index
    %c0_7 = arith.constant 0 : index
    %9 = vector.load %arg4[%c0_6, %c0_7] : memref<64x32xbf16, #tpu.memory_space<vmem>>, vector<64x32xbf16>
    %c0_8 = arith.constant 0 : index
    %c0_9 = arith.constant 0 : index
    %10 = vector.load %arg5[%c0_8, %c0_9] : memref<1x32xf32, #tpu.memory_space<vmem>>, vector<1x32xf32>
    %cst_10 = arith.constant dense<0.000000e+00> : vector<16x32xf32>
    %11 = tpu.matmul %8, %9, %cst_10 {dimension_numbers = #tpu.dot_dimension_numbers<[1], [0], [0], [1], [0, 0, 1, 1], [], []>} : vector<16x64xbf16>, vector<64x32xbf16>, vector<16x32xf32> -> vector<16x32xf32>
    %12 = vector.broadcast %10 : vector<1x32xf32> to vector<16x32xf32>
    %13 = arith.addf %11, %12 : vector<16x32xf32>
    %cst_11 = arith.constant 0.000000e+00 : f32
    %14 = vector.broadcast %cst_11 : f32 to vector<16x32xf32>
    %15 = arith.maximumf %13, %14 : vector<16x32xf32>
    %16 = arith.truncf %15 : vector<16x32xf32> to vector<16x32xbf16>
    %c0_12 = arith.constant 0 : index
    %c0_13 = arith.constant 0 : index
    %17 = vector.load %arg6[%c0_12, %c0_13] : memref<32x64xbf16, #tpu.memory_space<vmem>>, vector<32x64xbf16>
    %c0_14 = arith.constant 0 : index
    %c0_15 = arith.constant 0 : index
    %18 = vector.load %arg7[%c0_14, %c0_15] : memref<1x64xf32, #tpu.memory_space<vmem>>, vector<1x64xf32>
    %cst_16 = arith.constant dense<0.000000e+00> : vector<16x64xf32>
    %19 = tpu.matmul %16, %17, %cst_16 {dimension_numbers = #tpu.dot_dimension_numbers<[1], [0], [0], [1], [0, 0, 1, 1], [], []>} : vector<16x32xbf16>, vector<32x64xbf16>, vector<16x64xf32> -> vector<16x64xf32>
    %20 = vector.broadcast %18 : vector<1x64xf32> to vector<16x64xf32>
    %21 = arith.addf %19, %20 : vector<16x64xf32>
    %cst_17 = arith.constant 0.000000e+00 : f32
    %22 = vector.broadcast %cst_17 : f32 to vector<16x64xf32>
    %23 = arith.maximumf %21, %22 : vector<16x64xf32>
    %24 = arith.truncf %23 : vector<16x64xf32> to vector<16x64xbf16>
    %c0_18 = arith.constant 0 : index
    %c0_19 = arith.constant 0 : index
    %25 = vector.load %arg8[%c0_18, %c0_19] : memref<64x32xbf16, #tpu.memory_space<vmem>>, vector<64x32xbf16>
    %c0_20 = arith.constant 0 : index
    %c0_21 = arith.constant 0 : index
    %26 = vector.load %arg9[%c0_20, %c0_21] : memref<1x32xf32, #tpu.memory_space<vmem>>, vector<1x32xf32>
    %cst_22 = arith.constant dense<0.000000e+00> : vector<16x32xf32>
    %27 = tpu.matmul %24, %25, %cst_22 {dimension_numbers = #tpu.dot_dimension_numbers<[1], [0], [0], [1], [0, 0, 1, 1], [], []>} : vector<16x64xbf16>, vector<64x32xbf16>, vector<16x32xf32> -> vector<16x32xf32>
    %28 = vector.broadcast %26 : vector<1x32xf32> to vector<16x32xf32>
    %29 = arith.addf %27, %28 : vector<16x32xf32>
    %cst_23 = arith.constant 0.000000e+00 : f32
    %30 = vector.broadcast %cst_23 : f32 to vector<16x32xf32>
    %31 = arith.maximumf %29, %30 : vector<16x32xf32>
    %32 = arith.truncf %31 : vector<16x32xf32> to vector<16x32xbf16>
    %c0_24 = arith.constant 0 : index
    %c0_25 = arith.constant 0 : index
    %33 = vector.load %arg10[%c0_24, %c0_25] : memref<32x2xbf16, #tpu.memory_space<vmem>>, vector<32x2xbf16>
    %c0_26 = arith.constant 0 : index
    %c0_27 = arith.constant 0 : index
    %34 = vector.load %arg11[%c0_26, %c0_27] : memref<1x2xf32, #tpu.memory_space<vmem>>, vector<1x2xf32>
    %cst_28 = arith.constant dense<0.000000e+00> : vector<16x2xf32>
    %35 = tpu.matmul %32, %33, %cst_28 {dimension_numbers = #tpu.dot_dimension_numbers<[1], [0], [0], [1], [0, 0, 1, 1], [], []>} : vector<16x32xbf16>, vector<32x2xbf16>, vector<16x2xf32> -> vector<16x2xf32>
    %36 = vector.broadcast %34 : vector<1x2xf32> to vector<16x2xf32>
    %37 = arith.addf %35, %36 : vector<16x2xf32>
    %38 = arith.negf %37 : vector<16x2xf32>
    %39 = math.exp %38 : vector<16x2xf32>
    %cst_29 = arith.constant 1.000000e+00 : f32
    %40 = vector.broadcast %cst_29 : f32 to vector<16x2xf32>
    %41 = arith.addf %40, %39 : vector<16x2xf32>
    %42 = arith.divf %40, %41 : vector<16x2xf32>
    %c0_30 = arith.constant 0 : index
    %c0_31 = arith.constant 0 : index
    %43 = vector.load %arg12[%c0_30, %c0_31] : memref<16x2xf32, #tpu.memory_space<vmem>>, vector<16x2xf32>
    tpu.vector_store %arg12[%c0_30, %c0_31], %42 {strides = array<i32>} : memref<16x2xf32, #tpu.memory_space<vmem>>, vector<16x2xf32>,
    return
  }
  func.func @transform_0(%arg0: i32) -> (i32, i32) {
    %c0_i32 = arith.constant 0 : i32
    %c0_i32_0 = arith.constant 0 : i32
    return %arg0, %c0_i32 : i32, i32
  }
  func.func @transform_1(%arg0: i32) -> (i32, i32) {
    %c0_i32 = arith.constant 0 : i32
    %c0_i32_0 = arith.constant 0 : i32
    %c0_i32_1 = arith.constant 0 : i32
    return %c0_i32, %c0_i32_0 : i32, i32
  }
  func.func @transform_2(%arg0: i32) -> (i32, i32) {
    %c0_i32 = arith.constant 0 : i32
    %c0_i32_0 = arith.constant 0 : i32
    %c0_i32_1 = arith.constant 0 : i32
    return %c0_i32, %c0_i32_0 : i32, i32
  }
  func.func @transform_3(%arg0: i32) -> (i32, i32) {
    %c0_i32 = arith.constant 0 : i32
    %c0_i32_0 = arith.constant 0 : i32
    %c0_i32_1 = arith.constant 0 : i32
    return %c0_i32, %c0_i32_0 : i32, i32
  }
  func.func @transform_4(%arg0: i32) -> (i32, i32) {
    %c0_i32 = arith.constant 0 : i32
    %c0_i32_0 = arith.constant 0 : i32
    %c0_i32_1 = arith.constant 0 : i32
    return %c0_i32, %c0_i32_0 : i32, i32
  }
  func.func @transform_5(%arg0: i32) -> (i32, i32) {
    %c0_i32 = arith.constant 0 : i32
    %c0_i32_0 = arith.constant 0 : i32
    %c0_i32_1 = arith.constant 0 : i32
    return %c0_i32, %c0_i32_0 : i32, i32
  }
  func.func @transform_6(%arg0: i32) -> (i32, i32) {
    %c0_i32 = arith.constant 0 : i32
    %c0_i32_0 = arith.constant 0 : i32
    %c0_i32_1 = arith.constant 0 : i32
    return %c0_i32, %c0_i32_0 : i32, i32
  }
  func.func @transform_7(%arg0: i32) -> (i32, i32) {
    %c0_i32 = arith.constant 0 : i32
    %c0_i32_0 = arith.constant 0 : i32
    %c0_i32_1 = arith.constant 0 : i32
    return %c0_i32, %c0_i32_0 : i32, i32
  }
  func.func @transform_8(%arg0: i32) -> (i32, i32) {
    %c0_i32 = arith.constant 0 : i32
    %c0_i32_0 = arith.constant 0 : i32
    %c0_i32_1 = arith.constant 0 : i32
    return %c0_i32, %c0_i32_0 : i32, i32
  }
  func.func @transform_9(%arg0: i32) -> (i32, i32) {
    %c0_i32 = arith.constant 0 : i32
    %c0_i32_0 = arith.constant 0 : i32
    %c0_i32_1 = arith.constant 0 : i32
    return %c0_i32, %c0_i32_0 : i32, i32
  }
  func.func @transform_10(%arg0: i32) -> (i32, i32) {
    %c0_i32 = arith.constant 0 : i32
    %c0_i32_0 = arith.constant 0 : i32
    %c0_i32_1 = arith.constant 0 : i32
    return %c0_i32, %c0_i32_0 : i32, i32
  }
  func.func @transform_11(%arg0: i32) -> (i32, i32) {
    %c0_i32 = arith.constant 0 : i32
    %c0_i32_0 = arith.constant 0 : i32
    return %arg0, %c0_i32 : i32, i32
  }
}

module attributes {stable_mosaic.version = 11 : i64} {
  func.func @shared_bottom_kernel(%arg0: i32, %arg1: memref<16x53xbf16, #tpu.memory_space<vmem>>, %arg2: memref<53x64xbf16, #tpu.memory_space<vmem>>, %arg3: memref<1x64xf32, #tpu.memory_space<vmem>>, %arg4: memref<64x32xbf16, #tpu.memory_space<vmem>>, %arg5: memref<1x32xf32, #tpu.memory_space<vmem>>, %arg6: memref<32x64xbf16, #tpu.memory_space<vmem>>, %arg7: memref<1x64xf32, #tpu.memory_space<vmem>>, %arg8: memref<64x32xbf16, #tpu.memory_space<vmem>>, %arg9: memref<1x32xf32, #tpu.memory_space<vmem>>, %arg10: memref<32x2xbf16, #tpu.memory_space<vmem>>, %arg11: memref<1x2xf32, #tpu.memory_space<vmem>>, %arg12: memref<16x2xf32, #tpu.memory_space<vmem>>) attributes {dimension_semantics = [#tpu.dimension_semantics<parallel>], iteration_bounds = array<i64: 1>, scalar_prefetch = 0 : i64, scratch_operands = 0 : i64, tpu.core_type = #tpu.core_type<tc>, window_params = [{transform_indices = @transform_0, window_bounds = array<i64: 16, 53>}, {pipeline_mode = #tpu.pipeline_mode<synchronous>, transform_indices = @transform_1, window_bounds = array<i64: 53, 64>}, {pipeline_mode = #tpu.pipeline_mode<synchronous>, transform_indices = @transform_2, window_bounds = array<i64: 1, 64>}, {pipeline_mode = #tpu.pipeline_mode<synchronous>, transform_indices = @transform_3, window_bounds = array<i64: 64, 32>}, {pipeline_mode = #tpu.pipeline_mode<synchronous>, transform_indices = @transform_4, window_bounds = array<i64: 1, 32>}, {pipeline_mode = #tpu.pipeline_mode<synchronous>, transform_indices = @transform_5, window_bounds = array<i64: 32, 64>}, {pipeline_mode = #tpu.pipeline_mode<synchronous>, transform_indices = @transform_6, window_bounds = array<i64: 1, 64>}, {pipeline_mode = #tpu.pipeline_mode<synchronous>, transform_indices = @transform_7, window_bounds = array<i64: 64, 32>}, {pipeline_mode = #tpu.pipeline_mode<synchronous>, transform_indices = @transform_8, window_bounds = array<i64: 1, 32>}, {pipeline_mode = #tpu.pipeline_mode<synchronous>, transform_indices = @transform_9, window_bounds = array<i64: 32, 2>}, {pipeline_mode = #tpu.pipeline_mode<synchronous>, transform_indices = @transform_10, window_bounds = array<i64: 1, 2>}, {transform_indices = @transform_11, window_bounds = array<i64: 16, 2>}]} {
    %c0 = arith.constant 0 : index
    %c0_0 = arith.constant 0 : index
    %0 = vector.load %arg1[%c0, %c0_0] : memref<16x53xbf16, #tpu.memory_space<vmem>>, vector<16x53xbf16>
    %c0_1 = arith.constant 0 : index
    %c0_2 = arith.constant 0 : index
    %1 = vector.load %arg2[%c0_1, %c0_2] : memref<53x64xbf16, #tpu.memory_space<vmem>>, vector<53x64xbf16>
    %c0_3 = arith.constant 0 : index
    %c0_4 = arith.constant 0 : index
    %2 = vector.load %arg3[%c0_3, %c0_4] : memref<1x64xf32, #tpu.memory_space<vmem>>, vector<1x64xf32>
    %cst = arith.constant dense<0.000000e+00> : vector<16x64xf32>
    %3 = tpu.matmul %0, %1, %cst {dimension_numbers = #tpu.dot_dimension_numbers<[1], [0], [0], [1], [0, 0, 1, 1], [], []>} : vector<16x53xbf16>, vector<53x64xbf16>, vector<16x64xf32> -> vector<16x64xf32>
    %4 = vector.broadcast %2 : vector<1x64xf32> to vector<16x64xf32>
    %5 = arith.addf %3, %4 : vector<16x64xf32>
    %cst_5 = arith.constant 0.000000e+00 : f32
    %6 = vector.broadcast %cst_5 : f32 to vector<16x64xf32>
    %7 = arith.maximumf %5, %6 : vector<16x64xf32>
    %8 = arith.truncf %7 : vector<16x64xf32> to vector<16x64xbf16>
    %c0_6 = arith.constant 0 : index
    %c0_7 = arith.constant 0 : index
    %9 = vector.load %arg4[%c0_6, %c0_7] : memref<64x32xbf16, #tpu.memory_space<vmem>>, vector<64x32xbf16>
    %c0_8 = arith.constant 0 : index
    %c0_9 = arith.constant 0 : index
    %10 = vector.load %arg5[%c0_8, %c0_9] : memref<1x32xf32, #tpu.memory_space<vmem>>, vector<1x32xf32>
    %cst_10 = arith.constant dense<0.000000e+00> : vector<16x32xf32>
    %11 = tpu.matmul %8, %9, %cst_10 {dimension_numbers = #tpu.dot_dimension_numbers<[1], [0], [0], [1], [0, 0, 1, 1], [], []>} : vector<16x64xbf16>, vector<64x32xbf16>, vector<16x32xf32> -> vector<16x32xf32>
    %12 = vector.broadcast %10 : vector<1x32xf32> to vector<16x32xf32>
    %13 = arith.addf %11, %12 : vector<16x32xf32>
    %cst_11 = arith.constant 0.000000e+00 : f32
    %14 = vector.broadcast %cst_11 : f32 to vector<16x32xf32>
    %15 = arith.maximumf %13, %14 : vector<16x32xf32>
    %16 = arith.truncf %15 : vector<16x32xf32> to vector<16x32xbf16>
    %c0_12 = arith.constant 0 : index
    %c0_13 = arith.constant 0 : index
    %17 = vector.load %arg6[%c0_12, %c0_13] : memref<32x64xbf16, #tpu.memory_space<vmem>>, vector<32x64xbf16>
    %c0_14 = arith.constant 0 : index
    %c0_15 = arith.constant 0 : index
    %18 = vector.load %arg7[%c0_14, %c0_15] : memref<1x64xf32, #tpu.memory_space<vmem>>, vector<1x64xf32>
    %cst_16 = arith.constant dense<0.000000e+00> : vector<16x64xf32>
    %19 = tpu.matmul %16, %17, %cst_16 {dimension_numbers = #tpu.dot_dimension_numbers<[1], [0], [0], [1], [0, 0, 1, 1], [], []>} : vector<16x32xbf16>, vector<32x64xbf16>, vector<16x64xf32> -> vector<16x64xf32>
    %20 = vector.broadcast %18 : vector<1x64xf32> to vector<16x64xf32>
    %21 = arith.addf %19, %20 : vector<16x64xf32>
    %cst_17 = arith.constant 0.000000e+00 : f32
    %22 = vector.broadcast %cst_17 : f32 to vector<16x64xf32>
    %23 = arith.maximumf %21, %22 : vector<16x64xf32>
    %24 = arith.truncf %23 : vector<16x64xf32> to vector<16x64xbf16>
    %c0_18 = arith.constant 0 : index
    %c0_19 = arith.constant 0 : index
    %25 = vector.load %arg8[%c0_18, %c0_19] : memref<64x32xbf16, #tpu.memory_space<vmem>>, vector<64x32xbf16>
    %c0_20 = arith.constant 0 : index
    %c0_21 = arith.constant 0 : index
    %26 = vector.load %arg9[%c0_20, %c0_21] : memref<1x32xf32, #tpu.memory_space<vmem>>, vector<1x32xf32>
    %cst_22 = arith.constant dense<0.000000e+00> : vector<16x32xf32>
    %27 = tpu.matmul %24, %25, %cst_22 {dimension_numbers = #tpu.dot_dimension_numbers<[1], [0], [0], [1], [0, 0, 1, 1], [], []>} : vector<16x64xbf16>, vector<64x32xbf16>, vector<16x32xf32> -> vector<16x32xf32>
    %28 = vector.broadcast %26 : vector<1x32xf32> to vector<16x32xf32>
    %29 = arith.addf %27, %28 : vector<16x32xf32>
    %cst_23 = arith.constant 0.000000e+00 : f32
    %30 = vector.broadcast %cst_23 : f32 to vector<16x32xf32>
    %31 = arith.maximumf %29, %30 : vector<16x32xf32>
    %32 = arith.truncf %31 : vector<16x32xf32> to vector<16x32xbf16>
    %c0_24 = arith.constant 0 : index
    %c0_25 = arith.constant 0 : index
    %33 = vector.load %arg10[%c0_24, %c0_25] : memref<32x2xbf16, #tpu.memory_space<vmem>>, vector<32x2xbf16>
    %c0_26 = arith.constant 0 : index
    %c0_27 = arith.constant 0 : index
    %34 = vector.load %arg11[%c0_26, %c0_27] : memref<1x2xf32, #tpu.memory_space<vmem>>, vector<1x2xf32>
    %cst_28 = arith.constant dense<0.000000e+00> : vector<16x2xf32>
    %35 = tpu.matmul %32, %33, %cst_28 {dimension_numbers = #tpu.dot_dimension_numbers<[1], [0], [0], [1], [0, 0, 1, 1], [], []>} : vector<16x32xbf16>, vector<32x2xbf16>, vector<16x2xf32> -> vector<16x2xf32>
    %36 = vector.broadcast %34 : vector<1x2xf32> to vector<16x2xf32>
    %37 = arith.addf %35, %36 : vector<16x2xf32>
    %38 = arith.negf %37 : vector<16x2xf32>
    %39 = math.exp %38 : vector<16x2xf32>
    %cst_29 = arith.constant 1.000000e+00 : f32
    %40 = vector.broadcast %cst_29 : f32 to vector<16x2xf32>
    %41 = arith.addf %40, %39 : vector<16x2xf32>
    %42 = arith.divf %40, %41 : vector<16x2xf32>
    %c0_30 = arith.constant 0 : index
    %c0_31 = arith.constant 0 : index
    %43 = vector.load %arg12[%c0_30, %c0_31] : memref<16x2xf32, #tpu.memory_space<vmem>>, vector<16x2xf32>
    tpu.vector_store %arg12[%c0_30, %c0_31], %42 {strides = array<i32>} : memref<16x2xf32, #tpu.memory_space<vmem>>, vector<16x2xf32>,
    return
  }
  func.func @transform_0(%arg0: i32) -> (i32, i32) {
    %c0_i32 = arith.constant 0 : i32
    %c0_i32_0 = arith.constant 0 : i32
    return %arg0, %c0_i32 : i32, i32
  }
  func.func @transform_1(%arg0: i32) -> (i32, i32) {
    %c0_i32 = arith.constant 0 : i32
    %c0_i32_0 = arith.constant 0 : i32
    %c0_i32_1 = arith.constant 0 : i32
    return %c0_i32, %c0_i32_0 : i32, i32
  }
  func.func @transform_2(%arg0: i32) -> (i32, i32) {
    %c0_i32 = arith.constant 0 : i32
    %c0_i32_0 = arith.constant 0 : i32
    %c0_i32_1 = arith.constant 0 : i32
    return %c0_i32, %c0_i32_0 : i32, i32
  }
  func.func @transform_3(%arg0: i32) -> (i32, i32) {
    %c0_i32 = arith.constant 0 : i32
    %c0_i32_0 = arith.constant 0 : i32
    %c0_i32_1 = arith.constant 0 : i32
    return %c0_i32, %c0_i32_0 : i32, i32
  }
  func.func @transform_4(%arg0: i32) -> (i32, i32) {
    %c0_i32 = arith.constant 0 : i32
    %c0_i32_0 = arith.constant 0 : i32
    %c0_i32_1 = arith.constant 0 : i32
    return %c0_i32, %c0_i32_0 : i32, i32
  }
  func.func @transform_5(%arg0: i32) -> (i32, i32) {
    %c0_i32 = arith.constant 0 : i32
    %c0_i32_0 = arith.constant 0 : i32
    %c0_i32_1 = arith.constant 0 : i32
    return %c0_i32, %c0_i32_0 : i32, i32
  }
  func.func @transform_6(%arg0: i32) -> (i32, i32) {
    %c0_i32 = arith.constant 0 : i32
    %c0_i32_0 = arith.constant 0 : i32
    %c0_i32_1 = arith.constant 0 : i32
    return %c0_i32, %c0_i32_0 : i32, i32
  }
  func.func @transform_7(%arg0: i32) -> (i32, i32) {
    %c0_i32 = arith.constant 0 : i32
    %c0_i32_0 = arith.constant 0 : i32
    %c0_i32_1 = arith.constant 0 : i32
    return %c0_i32, %c0_i32_0 : i32, i32
  }
  func.func @transform_8(%arg0: i32) -> (i32, i32) {
    %c0_i32 = arith.constant 0 : i32
    %c0_i32_0 = arith.constant 0 : i32
    %c0_i32_1 = arith.constant 0 : i32
    return %c0_i32, %c0_i32_0 : i32, i32
  }
  func.func @transform_9(%arg0: i32) -> (i32, i32) {
    %c0_i32 = arith.constant 0 : i32
    %c0_i32_0 = arith.constant 0 : i32
    %c0_i32_1 = arith.constant 0 : i32
    return %c0_i32, %c0_i32_0 : i32, i32
  }
  func.func @transform_10(%arg0: i32) -> (i32, i32) {
    %c0_i32 = arith.constant 0 : i32
    %c0_i32_0 = arith.constant 0 : i32
    %c0_i32_1 = arith.constant 0 : i32
    return %c0_i32, %c0_i32_0 : i32, i32
  }
  func.func @transform_11(%arg0: i32) -> (i32, i32) {
    %c0_i32 = arith.constant 0 : i32
    %c0_i32_0 = arith.constant 0 : i32
    return %arg0, %c0_i32 : i32, i32
  }
}

</mosaic_0001>

<bundles_post_ra>
// kernel: _packed_forward.1
= control target key start
LH: loop header
LB: loop body
LE: loop exit
PB: predicated region body
PF: predicated region fallthrough
CT: control target
= control target key end

     0   :  { %vm85_vm0 = vcmask 1041408   ;;  %vm86_vm1 = vcmask 1042432   ;;  %v596_v0 = vmov 0.0   ;;  %v597_v2 = vmov 65535   ;;  %s761_s1 = inlined_call_operand.vmem [shape: bf16[53,64], index: 1, kind: input, shape index: {}]   ;;  %s762_s3 = inlined_call_operand.vmem [shape: bf16[64,32], index: 3, kind: input, shape index: {}]   ;;  %s763_s0 = inlined_call_operand.vmem [shape: bf16[16,53], index: 0, kind: input, shape index: {}]   ;;  %s764_s2 = inlined_call_operand.vmem [shape: f32[1,64], index: 2, kind: input, shape index: {}]   ;;  %s765_s5 = inlined_call_operand.vmem [shape: bf16[32,64], index: 5, kind: input, shape index: {}]   ;;  %s766_s7 = inlined_call_operand.vmem [shape: bf16[64,32], index: 7, kind: input, shape index: {}]   ;;  %s767_s4 = inlined_call_operand.vmem [shape: f32[1,32], index: 4, kind: input, shape index: {}]   ;;  %s768_s6 = inlined_call_operand.vmem [shape: f32[1,64], index: 6, kind: input, shape index: {}]   ;;  %s769_s9 = inlined_call_operand.vmem [shape: bf16[32,2], index: 9, kind: input, shape index: {}]   ;;  %s770_s8 = inlined_call_operand.vmem [shape: f32[1,32], index: 8, kind: input, shape index: {}]   ;;  %s771_s10 = inlined_call_operand.vmem [shape: f32[1,2], index: 10, kind: input, shape index: {}]   ;;  %s772_s11 = inlined_call_operand.vmem [shape: f32[16,2], index: 11, kind: output, shape index: {}]  }
   0x1   :  { %516 = vmatprep.subr.bf16.mxu0 %v596_v0  ;;  %v571_v1 = vld [vmem:[%s761_s1 + $0x18] ss:$0 sps:$4 sm:$0x77]   ;;  %v87_v3 = vsel %vm85_vm0, 4294967295, %v597_v2  ;;  %528 = vmatprep.subr.bf16.mxu1 %v596_v0  ;;  %vm598_vm2 = vmmov 0   ;;  %v572_v6 = vld [vmem:[%s761_s1 + $0x10] sm:$0xff]  }
   0x2   :  { %v88_v4 = vsel %vm86_vm1, %v87_v3, 0  ;;  %524 = vmatprep.mubr.msk.bf16.mxu0 %vm598_vm2, %v596_v0  ;;  %536 = vmatprep.mubr.msk.bf16.mxu1 %vm598_vm2, %v596_v0  ;;  %v576_v7 = vld [vmem:[%s762_s3 + $0x18] sm:$0xff]   ;;  %v573_v8 = vld [vmem:[%s761_s1 + $0x8] sm:$0xff]   ;;  %v574_v9 = vld [vmem:[%s761_s1] sm:$0xff]   ;;  %vm81_vm3 = vcmask 433152   ;;  %vm175_vm4 = vcmask 523264  }
   0x3   :  { %v90_v5 = vand.u32 %v571_v1, %v88_v4  ;;  %529 = vmatpush3.bf16.msra.mxu1 %v576_v7  ;;  %v575_v10 = vld [vmem:[%s763_s0] sm:$0xff]   ;;  %v577_v11 = vld [vmem:[%s762_s3 + $0x10] sm:$0xff]   ;;  %v578_v12 = vld [vmem:[%s762_s3 + $0x8] sm:$0xff]   ;;  %vm246_vm5 = vcmask 261120   ;;  %vm459_vm6 = vcmask 15360  }
   0x4   :  { %530 = vmatprep.subr.bf16.mxu1 %v596_v0  ;;  %v579_v13 = vld [vmem:[%s762_s3] sm:$0xff]   ;;  %v580_v24 = vld [vmem:[%s765_s5 + $0x8] sm:$0xff]   ;;  %v582_v26 = vld [vmem:[%s766_s7 + $0x18] sm:$0xff]  }
   0x5   :  { %517 = vmatpush3.bf16.msra.mxu0 %v90_v5  ;;  %v466_v14 = vld [vmem:[%s764_s2] ss:$0 sm:$0xff]  ;;  %v583_v37 = vld [vmem:[%s766_s7 + $0x10] sm:$0xff]   ;;  %v584_v38 = vld [vmem:[%s766_s7 + $0x8] sm:$0xff]  }
   0x6   :  { %518 = vmatprep.subr.bf16.mxu0 %v596_v0  ;;  %v581_v25 = vld [vmem:[%s765_s5] sm:$0xff]   ;;  %v586_v50 = vld [vmem:[%s769_s9 + $0x8] sm:$0xff]  }
   0x7   :  { %531 = vmatpush3.bf16.msra.mxu1 %v577_v11  ;;  %v473_v27 = vld [vmem:[%s767_s4] ss:$0 sm:$0xff] }
   0x8   :  { %532 = vmatprep.subr.bf16.mxu1 %v596_v0  ;;  %v585_v39 = vld [vmem:[%s766_s7] sm:$0xff]  }
   0x9   :  { %519 = vmatpush3.bf16.msra.mxu0 %v572_v6  ;;  %v479_v40 = vld [vmem:[%s768_s6] ss:$0 sm:$0xff] }
   0xa   :  { %520 = vmatprep.subr.bf16.mxu0 %v596_v0  ;;  %v587_v51 = vld [vmem:[%s769_s9] sm:$0xff]  }
   0xb   :  { %533 = vmatpush3.bf16.msra.mxu1 %v578_v12  ;;  %v483_v52 = vld [vmem:[%s770_s8] ss:$0 sm:$0xff] }
   0xc   :  { %534 = vmatprep.subr.bf16.mxu1 %v596_v0  ;;  %v489_v62 = vld [vmem:[%s771_s10] ss:$0 sm:$0xff] }
   0xd   :  { %521 = vmatpush3.bf16.msra.mxu0 %v573_v8 }
   0xe   :  { %522 = vmatprep.subr.bf16.mxu0 %v596_v0 }
   0xf   :  { %535 = vmatpush3.bf16.msra.mxu1 %v579_v13 }
  0x10   :  { %548 = vmatprep.subr.bf16.mxu1 %v596_v0 }
  0x11   :  { %523 = vmatpush3.bf16.msra.mxu0 %v574_v9 }
  0x12   :  { %540 = vmatprep.subr.bf16.mxu0 %v596_v0 }
  0x14   :  { %525 = vmatmul.mubr.msk.bf16.vlgmr.msra.gmra.mxu0 %vm81_vm3, %v575_v10 }
  0x15   :  { %544 = vmatprep.mubr.msk.bf16.mxu0 %vm598_vm2, %v596_v0  ;;  %541 = vmatpush3.bf16.msra.mxu0 %v580_v24 }
  0x16   :  { %542 = vmatprep.subr.bf16.mxu0 %v596_v0 }
  0x19   :  { %543 = vmatpush3.bf16.msra.mxu0 %v581_v25 }
  0x1a   :  { %560 = vmatprep.subr.bf16.mxu0 %v596_v0 }
  0xd4   :  { %v126_v15 = vpop.f32.mrf.mxu0 }
  0xd5   :  { %v127_v17 = vadd.f32 %v466_v14, %v126_v15 }
  0xd6   :  { %v526_v16 = vpop.f32.mrf.mxu0 }
  0xd7   :  { %v133_v21 = vmax.f32 %v127_v17, 0.0 }
  0xd8   :  { %v129_v18 = vpop.f32.mrf.mxu0 }
  0xd9   :  { %v130_v19 = vadd.f32 %v466_v14, %v129_v18 }
  0xda   :  { %v527_v20 = vpop.f32.mrf.mxu0 }
  0xdb   :  { %v134_v22 = vmax.f32 %v130_v19, 0.0 }
  0xdd   :  { %v135_v23 = vpack.c.bf16 %v134_v22, %v133_v21 }
  0xdf   :  { %537 = vmatmul.mubr.msk.bf16.vlgmr.msra.gmra.mxu1 %vm175_vm4, %v135_v23 }
  0xe0   :  { %556 = vmatprep.mubr.msk.bf16.mxu1 %vm598_vm2, %v596_v0  ;;  %549 = vmatpush3.bf16.msra.mxu1 %v582_v26 }
  0xe1   :  { %550 = vmatprep.subr.bf16.mxu1 %v596_v0 }
  0xe4   :  { %551 = vmatpush3.bf16.msra.mxu1 %v583_v37 }
  0xe5   :  { %552 = vmatprep.subr.bf16.mxu1 %v596_v0 }
  0xe8   :  { %553 = vmatpush3.bf16.msra.mxu1 %v584_v38 }
  0xe9   :  { %554 = vmatprep.subr.bf16.mxu1 %v596_v0 }
  0xec   :  { %555 = vmatpush3.bf16.msra.mxu1 %v585_v39 }
 0x19f   :  { %v213_v28 = vpop.f32.mrf.mxu1 }
 0x1a0   :  { %v214_v30 = vadd.f32 %v473_v27, %v213_v28 }
 0x1a1   :  { %v538_v29 = vpop.f32.mrf.mxu1 }
 0x1a2   :  { %v220_v34 = vmax.f32 %v214_v30, 0.0 }
 0x1a3   :  { %v216_v31 = vpop.f32.mrf.mxu1 }
 0x1a4   :  { %v217_v32 = vadd.f32 %v473_v27, %v216_v31 }
 0x1a5   :  { %v539_v33 = vpop.f32.mrf.mxu1 }
 0x1a6   :  { %v221_v35 = vmax.f32 %v217_v32, 0.0 }
 0x1a8   :  { %v222_v36 = vpack.c.bf16 %v221_v35, %v220_v34 }
 0x1aa   :  { %545 = vmatmul.mubr.msk.bf16.vlgmr.msra.gmra.mxu0 %vm246_vm5, %v222_v36 }
 0x1ab   :  { %564 = vmatprep.mubr.msk.bf16.mxu0 %vm598_vm2, %v596_v0  ;;  %561 = vmatpush3.bf16.msra.mxu0 %v586_v50 }
 0x1ac   :  { %562 = vmatprep.subr.bf16.mxu0 %v596_v0 }
 0x1af   :  { %563 = vmatpush3.bf16.msra.mxu0 %v587_v51 }
 0x26a   :  { %v284_v41 = vpop.f32.mrf.mxu0 }
 0x26b   :  { %v285_v43 = vadd.f32 %v479_v40, %v284_v41 }
 0x26c   :  { %v546_v42 = vpop.f32.mrf.mxu0 }
 0x26d   :  { %v291_v47 = vmax.f32 %v285_v43, 0.0 }
 0x26e   :  { %v287_v44 = vpop.f32.mrf.mxu0 }
 0x26f   :  { %v288_v45 = vadd.f32 %v479_v40, %v287_v44 }
 0x270   :  { %v547_v46 = vpop.f32.mrf.mxu0 }
 0x271   :  { %v292_v48 = vmax.f32 %v288_v45, 0.0 }
 0x273   :  { %v293_v49 = vpack.c.bf16 %v292_v48, %v291_v47 }
 0x275   :  { %557 = vmatmul.mubr.msk.bf16.vlgmr.msra.gmra.mxu1 %vm175_vm4, %v293_v49 }
 0x335   :  { %v370_v53 = vpop.f32.mrf.mxu1 }
 0x336   :  { %v371_v55 = vadd.f32 %v483_v52, %v370_v53 }
 0x337   :  { %v558_v54 = vpop.f32.mrf.mxu1 }
 0x338   :  { %v377_v59 = vmax.f32 %v371_v55, 0.0 }
 0x339   :  { %v373_v56 = vpop.f32.mrf.mxu1 }
 0x33a   :  { %v374_v57 = vadd.f32 %v483_v52, %v373_v56 }
 0x33b   :  { %v559_v58 = vpop.f32.mrf.mxu1 }
 0x33c   :  { %v378_v60 = vmax.f32 %v374_v57, 0.0 }
 0x33e   :  { %v379_v61 = vpack.c.bf16 %v378_v60, %v377_v59 }
 0x340   :  { %565 = vmatmul.mubr.msk.bf16.vlgmr.msra.gmra.mxu0 %vm246_vm5, %v379_v61 }
 0x400   :  { %v440_v63 = vpop.f32.mrf.mxu0 }
 0x401   :  { %v441_v0 = vadd.f32 %v489_v62, %v440_v63 }
 0x402   :  { %v566_v1 = vpop.f32.mrf.mxu0 }
 0x403   :  { %v493_v2 = vmul.f32 -1.442695, %v441_v0 }
 0x404   :  { %v443_v3 = vpop.f32.mrf.mxu0 }
 0x405   :  { %588 = vpow2.f32 %v493_v2  ;;  %v444_v4 = vadd.f32 %v489_v62, %v443_v3 }
 0x406   :  { %v567_v5 = vpop.f32.mrf.mxu0 }
 0x407   :  { %v494_v6 = vmul.f32 -1.442695, %v444_v4 }
 0x409   :  { %590 = vpow2.f32 %v494_v6 }
 0x412   :  { %v589_v7 = vpop.eup %588 }
 0x413   :  { %v453_v8 = vadd.f32 1.0, %v589_v7 }
 0x415   :  { %592 = vrcp.f32 %v453_v8 }
 0x416   :  { %v591_v9 = vpop.eup %590 }
 0x417   :  { %v454_v10 = vadd.f32 1.0, %v591_v9 }
 0x419   :  { %594 = vrcp.f32 %v454_v10 }
 0x422   :  { %v593_v11 = vpop.eup %592 }
 0x423   :  { %460 = vst.msk [vmem:[%s772_s11] sm:$0xff] %vm459_vm6, %v593_v11 }
 0x426   :  { %v595_v12 = vpop.eup %594 }
 0x427   :  { %461 = vst.msk [vmem:[%s772_s11 + $0x8] sm:$0xff] %vm459_vm6, %v595_v12 }

// kernel: _packed_forward.1
= control target key start
LH: loop header
LB: loop body
LE: loop exit
PB: predicated region body
PF: predicated region fallthrough
CT: control target
= control target key end

     0   :  { %vm85_vm0 = vcmask 1041408   ;;  %vm86_vm1 = vcmask 1042432   ;;  %v596_v0 = vmov 0.0   ;;  %v597_v2 = vmov 65535   ;;  %s761_s1 = inlined_call_operand.vmem [shape: bf16[53,64], index: 1, kind: input, shape index: {}]   ;;  %s762_s3 = inlined_call_operand.vmem [shape: bf16[64,32], index: 3, kind: input, shape index: {}]   ;;  %s763_s0 = inlined_call_operand.vmem [shape: bf16[16,53], index: 0, kind: input, shape index: {}]   ;;  %s764_s2 = inlined_call_operand.vmem [shape: f32[1,64], index: 2, kind: input, shape index: {}]   ;;  %s765_s5 = inlined_call_operand.vmem [shape: bf16[32,64], index: 5, kind: input, shape index: {}]   ;;  %s766_s7 = inlined_call_operand.vmem [shape: bf16[64,32], index: 7, kind: input, shape index: {}]   ;;  %s767_s4 = inlined_call_operand.vmem [shape: f32[1,32], index: 4, kind: input, shape index: {}]   ;;  %s768_s6 = inlined_call_operand.vmem [shape: f32[1,64], index: 6, kind: input, shape index: {}]   ;;  %s769_s9 = inlined_call_operand.vmem [shape: bf16[32,2], index: 9, kind: input, shape index: {}]   ;;  %s770_s8 = inlined_call_operand.vmem [shape: f32[1,32], index: 8, kind: input, shape index: {}]   ;;  %s771_s10 = inlined_call_operand.vmem [shape: f32[1,2], index: 10, kind: input, shape index: {}]   ;;  %s772_s11 = inlined_call_operand.vmem [shape: f32[16,2], index: 11, kind: output, shape index: {}]  }
   0x1   :  { %516 = vmatprep.subr.bf16.mxu0 %v596_v0  ;;  %v571_v1 = vld [vmem:[%s761_s1 + $0x18] ss:$0 sps:$4 sm:$0x77]   ;;  %v87_v3 = vsel %vm85_vm0, 4294967295, %v597_v2  ;;  %528 = vmatprep.subr.bf16.mxu1 %v596_v0  ;;  %vm598_vm2 = vmmov 0   ;;  %v572_v6 = vld [vmem:[%s761_s1 + $0x10] sm:$0xff]  }
   0x2   :  { %v88_v4 = vsel %vm86_vm1, %v87_v3, 0  ;;  %524 = vmatprep.mubr.msk.bf16.mxu0 %vm598_vm2, %v596_v0  ;;  %536 = vmatprep.mubr.msk.bf16.mxu1 %vm598_vm2, %v596_v0  ;;  %v576_v7 = vld [vmem:[%s762_s3 + $0x18] sm:$0xff]   ;;  %v573_v8 = vld [vmem:[%s761_s1 + $0x8] sm:$0xff]   ;;  %v574_v9 = vld [vmem:[%s761_s1] sm:$0xff]   ;;  %vm81_vm3 = vcmask 433152   ;;  %vm175_vm4 = vcmask 523264  }
   0x3   :  { %v90_v5 = vand.u32 %v571_v1, %v88_v4  ;;  %529 = vmatpush3.bf16.msra.mxu1 %v576_v7  ;;  %v575_v10 = vld [vmem:[%s763_s0] sm:$0xff]   ;;  %v577_v11 = vld [vmem:[%s762_s3 + $0x10] sm:$0xff]   ;;  %v578_v12 = vld [vmem:[%s762_s3 + $0x8] sm:$0xff]   ;;  %vm246_vm5 = vcmask 261120   ;;  %vm459_vm6 = vcmask 15360  }
   0x4   :  { %530 = vmatprep.subr.bf16.mxu1 %v596_v0  ;;  %v579_v13 = vld [vmem:[%s762_s3] sm:$0xff]   ;;  %v580_v24 = vld [vmem:[%s765_s5 + $0x8] sm:$0xff]   ;;  %v582_v26 = vld [vmem:[%s766_s7 + $0x18] sm:$0xff]  }
   0x5   :  { %517 = vmatpush3.bf16.msra.mxu0 %v90_v5  ;;  %v466_v14 = vld [vmem:[%s764_s2] ss:$0 sm:$0xff]  ;;  %v583_v37 = vld [vmem:[%s766_s7 + $0x10] sm:$0xff]   ;;  %v584_v38 = vld [vmem:[%s766_s7 + $0x8] sm:$0xff]  }
   0x6   :  { %518 = vmatprep.subr.bf16.mxu0 %v596_v0  ;;  %v581_v25 = vld [vmem:[%s765_s5] sm:$0xff]   ;;  %v586_v50 = vld [vmem:[%s769_s9 + $0x8] sm:$0xff]  }
   0x7   :  { %531 = vmatpush3.bf16.msra.mxu1 %v577_v11  ;;  %v473_v27 = vld [vmem:[%s767_s4] ss:$0 sm:$0xff] }
   0x8   :  { %532 = vmatprep.subr.bf16.mxu1 %v596_v0  ;;  %v585_v39 = vld [vmem:[%s766_s7] sm:$0xff]  }
   0x9   :  { %519 = vmatpush3.bf16.msra.mxu0 %v572_v6  ;;  %v479_v40 = vld [vmem:[%s768_s6] ss:$0 sm:$0xff] }
   0xa   :  { %520 = vmatprep.subr.bf16.mxu0 %v596_v0  ;;  %v587_v51 = vld [vmem:[%s769_s9] sm:$0xff]  }
   0xb   :  { %533 = vmatpush3.bf16.msra.mxu1 %v578_v12  ;;  %v483_v52 = vld [vmem:[%s770_s8] ss:$0 sm:$0xff] }
   0xc   :  { %534 = vmatprep.subr.bf16.mxu1 %v596_v0  ;;  %v489_v62 = vld [vmem:[%s771_s10] ss:$0 sm:$0xff] }
   0xd   :  { %521 = vmatpush3.bf16.msra.mxu0 %v573_v8 }
   0xe   :  { %522 = vmatprep.subr.bf16.mxu0 %v596_v0 }
   0xf   :  { %535 = vmatpush3.bf16.msra.mxu1 %v579_v13 }
  0x10   :  { %548 = vmatprep.subr.bf16.mxu1 %v596_v0 }
  0x11   :  { %523 = vmatpush3.bf16.msra.mxu0 %v574_v9 }
  0x12   :  { %540 = vmatprep.subr.bf16.mxu0 %v596_v0 }
  0x14   :  { %525 = vmatmul.mubr.msk.bf16.vlgmr.msra.gmra.mxu0 %vm81_vm3, %v575_v10 }
  0x15   :  { %544 = vmatprep.mubr.msk.bf16.mxu0 %vm598_vm2, %v596_v0  ;;  %541 = vmatpush3.bf16.msra.mxu0 %v580_v24 }
  0x16   :  { %542 = vmatprep.subr.bf16.mxu0 %v596_v0 }
  0x19   :  { %543 = vmatpush3.bf16.msra.mxu0 %v581_v25 }
  0x1a   :  { %560 = vmatprep.subr.bf16.mxu0 %v596_v0 }
  0xd4   :  { %v126_v15 = vpop.f32.mrf.mxu0 }
  0xd5   :  { %v127_v17 = vadd.f32 %v466_v14, %v126_v15 }
  0xd6   :  { %v526_v16 = vpop.f32.mrf.mxu0 }
  0xd7   :  { %v133_v21 = vmax.f32 %v127_v17, 0.0 }
  0xd8   :  { %v129_v18 = vpop.f32.mrf.mxu0 }
  0xd9   :  { %v130_v19 = vadd.f32 %v466_v14, %v129_v18 }
  0xda   :  { %v527_v20 = vpop.f32.mrf.mxu0 }
  0xdb   :  { %v134_v22 = vmax.f32 %v130_v19, 0.0 }
  0xdd   :  { %v135_v23 = vpack.c.bf16 %v134_v22, %v133_v21 }
  0xdf   :  { %537 = vmatmul.mubr.msk.bf16.vlgmr.msra.gmra.mxu1 %vm175_vm4, %v135_v23 }
  0xe0   :  { %556 = vmatprep.mubr.msk.bf16.mxu1 %vm598_vm2, %v596_v0  ;;  %549 = vmatpush3.bf16.msra.mxu1 %v582_v26 }
  0xe1   :  { %550 = vmatprep.subr.bf16.mxu1 %v596_v0 }
  0xe4   :  { %551 = vmatpush3.bf16.msra.mxu1 %v583_v37 }
  0xe5   :  { %552 = vmatprep.subr.bf16.mxu1 %v596_v0 }
  0xe8   :  { %553 = vmatpush3.bf16.msra.mxu1 %v584_v38 }
  0xe9   :  { %554 = vmatprep.subr.bf16.mxu1 %v596_v0 }
  0xec   :  { %555 = vmatpush3.bf16.msra.mxu1 %v585_v39 }
 0x19f   :  { %v213_v28 = vpop.f32.mrf.mxu1 }
 0x1a0   :  { %v214_v30 = vadd.f32 %v473_v27, %v213_v28 }
 0x1a1   :  { %v538_v29 = vpop.f32.mrf.mxu1 }
 0x1a2   :  { %v220_v34 = vmax.f32 %v214_v30, 0.0 }
 0x1a3   :  { %v216_v31 = vpop.f32.mrf.mxu1 }
 0x1a4   :  { %v217_v32 = vadd.f32 %v473_v27, %v216_v31 }
 0x1a5   :  { %v539_v33 = vpop.f32.mrf.mxu1 }
 0x1a6   :  { %v221_v35 = vmax.f32 %v217_v32, 0.0 }
 0x1a8   :  { %v222_v36 = vpack.c.bf16 %v221_v35, %v220_v34 }
 0x1aa   :  { %545 = vmatmul.mubr.msk.bf16.vlgmr.msra.gmra.mxu0 %vm246_vm5, %v222_v36 }
 0x1ab   :  { %564 = vmatprep.mubr.msk.bf16.mxu0 %vm598_vm2, %v596_v0  ;;  %561 = vmatpush3.bf16.msra.mxu0 %v586_v50 }
 0x1ac   :  { %562 = vmatprep.subr.bf16.mxu0 %v596_v0 }
 0x1af   :  { %563 = vmatpush3.bf16.msra.mxu0 %v587_v51 }
 0x26a   :  { %v284_v41 = vpop.f32.mrf.mxu0 }
 0x26b   :  { %v285_v43 = vadd.f32 %v479_v40, %v284_v41 }
 0x26c   :  { %v546_v42 = vpop.f32.mrf.mxu0 }
 0x26d   :  { %v291_v47 = vmax.f32 %v285_v43, 0.0 }
 0x26e   :  { %v287_v44 = vpop.f32.mrf.mxu0 }
 0x26f   :  { %v288_v45 = vadd.f32 %v479_v40, %v287_v44 }
 0x270   :  { %v547_v46 = vpop.f32.mrf.mxu0 }
 0x271   :  { %v292_v48 = vmax.f32 %v288_v45, 0.0 }
 0x273   :  { %v293_v49 = vpack.c.bf16 %v292_v48, %v291_v47 }
 0x275   :  { %557 = vmatmul.mubr.msk.bf16.vlgmr.msra.gmra.mxu1 %vm175_vm4, %v293_v49 }
 0x335   :  { %v370_v53 = vpop.f32.mrf.mxu1 }
 0x336   :  { %v371_v55 = vadd.f32 %v483_v52, %v370_v53 }
 0x337   :  { %v558_v54 = vpop.f32.mrf.mxu1 }
 0x338   :  { %v377_v59 = vmax.f32 %v371_v55, 0.0 }
 0x339   :  { %v373_v56 = vpop.f32.mrf.mxu1 }
 0x33a   :  { %v374_v57 = vadd.f32 %v483_v52, %v373_v56 }
 0x33b   :  { %v559_v58 = vpop.f32.mrf.mxu1 }
 0x33c   :  { %v378_v60 = vmax.f32 %v374_v57, 0.0 }
 0x33e   :  { %v379_v61 = vpack.c.bf16 %v378_v60, %v377_v59 }
 0x340   :  { %565 = vmatmul.mubr.msk.bf16.vlgmr.msra.gmra.mxu0 %vm246_vm5, %v379_v61 }
 0x400   :  { %v440_v63 = vpop.f32.mrf.mxu0 }
 0x401   :  { %v441_v0 = vadd.f32 %v489_v62, %v440_v63 }
 0x402   :  { %v566_v1 = vpop.f32.mrf.mxu0 }
 0x403   :  { %v493_v2 = vmul.f32 -1.442695, %v441_v0 }
 0x404   :  { %v443_v3 = vpop.f32.mrf.mxu0 }
 0x405   :  { %588 = vpow2.f32 %v493_v2  ;;  %v444_v4 = vadd.f32 %v489_v62, %v443_v3 }
 0x406   :  { %v567_v5 = vpop.f32.mrf.mxu0 }
 0x407   :  { %v494_v6 = vmul.f32 -1.442695, %v444_v4 }
 0x409   :  { %590 = vpow2.f32 %v494_v6 }
 0x412   :  { %v589_v7 = vpop.eup %588 }
 0x413   :  { %v453_v8 = vadd.f32 1.0, %v589_v7 }
 0x415   :  { %592 = vrcp.f32 %v453_v8 }
 0x416   :  { %v591_v9 = vpop.eup %590 }
 0x417   :  { %v454_v10 = vadd.f32 1.0, %v591_v9 }
 0x419   :  { %594 = vrcp.f32 %v454_v10 }
 0x422   :  { %v593_v11 = vpop.eup %592 }
 0x423   :  { %460 = vst.msk [vmem:[%s772_s11] sm:$0xff] %vm459_vm6, %v593_v11 }
 0x426   :  { %v595_v12 = vpop.eup %594 }
 0x427   :  { %461 = vst.msk [vmem:[%s772_s11 + $0x8] sm:$0xff] %vm459_vm6, %v595_v12 }

</bundles_post_ra>
